<compile_context>
chip_gen: v5e
topology: v5e:2x2
jax: 0.10.0
libtpu: 0.0.40
codegen_flags: <defaults>
</compile_context>

<pallas_src>
import functools

import jax
import jax.numpy as jnp
from jax.experimental import pallas as pl
from jax.experimental.pallas import tpu as pltpu


def _mha_fused_kernel(x_ref, wq_ref, wk_ref, wv_ref, wp_ref, bp_ref, o_ref, *,
                      num_head, head_size):
    # x_ref : (1, T, C)       -- one batch row
    # wq/wk/wv_ref : (C, H*hs) -- fused per-head projections
    # wp_ref: (H*hs, C), bp_ref: (1, C)
    # o_ref : (1, T, C)       -- lane-dense output tile
    x = x_ref[0]                                    # (T, C)
    T = x.shape[0]
    scale = jnp.float32(head_size ** 0.5)           # matches the PyTorch code (multiply)

    # One wide matmul per projection for ALL heads (lane-dense MXU use).
    # Scale folded into q before the score matmul.
    q_all = jnp.dot(x, wq_ref[...], preferred_element_type=jnp.float32) * scale  # (T, H*hs)
    k_all = jnp.dot(x, wk_ref[...], preferred_element_type=jnp.float32)          # (T, H*hs)
    v_all = jnp.dot(x, wv_ref[...], preferred_element_type=jnp.float32)          # (T, H*hs)

    # Causal mask built once for all heads.
    row = jax.lax.broadcasted_iota(jnp.int32, (T, T), 0)
    col = jax.lax.broadcasted_iota(jnp.int32, (T, T), 1)
    causal = col <= row
    neg = jnp.float32(-1e30)   # large finite negative (robust vs. NaN on masked rows)

    head_outs = []
    for h in range(num_head):                       # static unrolled loop (H is small)
        lo, hi = h * head_size, (h + 1) * head_size
        q = q_all[:, lo:hi]                         # (T, hs)
        k = k_all[:, lo:hi]
        v = v_all[:, lo:hi]

        # Contract last dims of q and k directly (no explicit transpose of k).
        wei = jax.lax.dot_general(q, k, (((1,), (1,)), ((), ())),
                                  preferred_element_type=jnp.float32)  # (T, T)
        wei = jnp.where(causal, wei, neg)

        # Numerically-stable softmax; reciprocal goes to the EUP slot.
        wei = wei - jnp.max(wei, axis=-1, keepdims=True)
        p = jnp.exp(wei)
        denom = jnp.sum(p, axis=-1, keepdims=True)
        p = p * pl.reciprocal(denom, approx=True)

        head_outs.append(jnp.dot(p, v, preferred_element_type=jnp.float32))  # (T, hs)

    # Concat heads in VMEM and apply the output projection in the same kernel.
    cat = jnp.concatenate(head_outs, axis=-1)       # (T, H*hs)
    out = jnp.dot(cat, wp_ref[...], preferred_element_type=jnp.float32) + bp_ref[...]
    o_ref[...] = out[None].astype(o_ref.dtype)


def multi_head_attention(x, wq, wk, wv, w_proj, b_proj):
    """x: (B, T, C); wq/wk/wv: (H, C, hs); w_proj: (H*hs, C); b_proj: (1, C)."""
    B, T, C = x.shape
    H, _, hs = wq.shape

    # Fuse per-head weights into lane-dense (C, H*hs) matrices (head-major on lanes,
    # matching torch.cat([... per head ...], dim=-1) concat order).
    wq_f = jnp.transpose(wq, (1, 0, 2)).reshape(C, H * hs)
    wk_f = jnp.transpose(wk, (1, 0, 2)).reshape(C, H * hs)
    wv_f = jnp.transpose(wv, (1, 0, 2)).reshape(C, H * hs)

    kernel = functools.partial(_mha_fused_kernel, num_head=H, head_size=hs)

    out = pl.pallas_call(
        kernel,
        out_shape=jax.ShapeDtypeStruct((B, T, C), x.dtype),
        grid_spec=pltpu.PrefetchScalarGridSpec(
            num_scalar_prefetch=0,
            grid=(B,),                                   # one step per batch row
            in_specs=[
                pl.BlockSpec((1, T, C), lambda b: (b, 0, 0)),
                pl.BlockSpec((C, H * hs), lambda b: (0, 0)),
                pl.BlockSpec((C, H * hs), lambda b: (0, 0)),
                pl.BlockSpec((C, H * hs), lambda b: (0, 0)),
                pl.BlockSpec((H * hs, C), lambda b: (0, 0)),
                pl.BlockSpec((1, C), lambda b: (0, 0)),
            ],
            out_specs=pl.BlockSpec((1, T, C), lambda b: (b, 0, 0)),
        ),
        compiler_params=pltpu.CompilerParams(
            dimension_semantics=("parallel",)),          # lets v7x shard batch over 2 TCs
    )(x, wq_f, wk_f, wv_f, w_proj, b_proj)
    return out


def _reference(x, wq, wk, wv, w_proj, b_proj):
    """Pure-JAX reference matching the PyTorch forward (eval mode)."""
    B, T, C = x.shape
    H, _, hs = wq.shape
    head_outs = []
    tril = jnp.tril(jnp.ones((T, T)))
    for h in range(H):
        q = x @ wq[h]
        k = x @ wk[h]
        v = x @ wv[h]
        wei = q @ jnp.swapaxes(k, -2, -1) * (hs ** 0.5)
        wei = jnp.where(tril == 0, -jnp.inf, wei)
        wei = jax.nn.softmax(wei, axis=-1)
        head_outs.append(wei @ v)
    cat = jnp.concatenate(head_outs, axis=-1)
    return cat @ w_proj + b_proj[0]


if __name__ == "__main__":
    # Small shapes consistent with the module.
    B, T = 2, 8                 # batch, sequence (block_size = 8)
    n_emb = 32
    num_head, head_size = 4, 8  # head_size * num_head == n_emb

    key = jax.random.PRNGKey(0)
    kx, kq, kk, kv, kp, kb = jax.random.split(key, 6)

    x = jax.random.normal(kx, (B, T, n_emb), dtype=jnp.float32)
    wq = jax.random.normal(kq, (num_head, n_emb, head_size), dtype=jnp.float32) * 0.1
    wk = jax.random.normal(kk, (num_head, n_emb, head_size), dtype=jnp.float32) * 0.1
    wv = jax.random.normal(kv, (num_head, n_emb, head_size), dtype=jnp.float32) * 0.1
    w_proj = jax.random.normal(kp, (num_head * head_size, n_emb), dtype=jnp.float32) * 0.1
    b_proj = jax.random.normal(kb, (1, n_emb), dtype=jnp.float32) * 0.1

    out = multi_head_attention(x, wq, wk, wv, w_proj, b_proj)
    out = jax.block_until_ready(out)

    ref = _reference(x, wq, wk, wv, w_proj, b_proj)
    assert out.shape == (B, T, n_emb)
    # Slightly looser tolerance to accommodate the EUP approximate reciprocal
    # in the softmax normalization (still well within bf16-class accuracy).
    assert jnp.allclose(out, ref, atol=2e-3, rtol=2e-3), "mismatch vs reference"

    print("KERNEL_OK")
</pallas_src>

<mosaic_0001>
module attributes {stable_mosaic.version = 11 : i64} {
  func.func @_mha_fused_kernel(%arg0: i32, %arg1: memref<1x8x32xf32, #tpu.memory_space<vmem>>, %arg2: memref<32x32xf32, #tpu.memory_space<vmem>>, %arg3: memref<32x32xf32, #tpu.memory_space<vmem>>, %arg4: memref<32x32xf32, #tpu.memory_space<vmem>>, %arg5: memref<32x32xf32, #tpu.memory_space<vmem>>, %arg6: memref<1x32xf32, #tpu.memory_space<vmem>>, %arg7: memref<1x8x32xf32, #tpu.memory_space<vmem>>) attributes {dimension_semantics = [#tpu.dimension_semantics<parallel>], iteration_bounds = array<i64: 2>, scalar_prefetch = 0 : i64, scratch_operands = 0 : i64, tpu.core_type = #tpu.core_type<tc>, window_params = [{transform_indices = @transform_0, window_bounds = array<i64: 1, 8, 32>}, {pipeline_mode = #tpu.pipeline_mode<synchronous>, transform_indices = @transform_1, window_bounds = array<i64: 32, 32>}, {pipeline_mode = #tpu.pipeline_mode<synchronous>, transform_indices = @transform_2, window_bounds = array<i64: 32, 32>}, {pipeline_mode = #tpu.pipeline_mode<synchronous>, transform_indices = @transform_3, window_bounds = array<i64: 32, 32>}, {pipeline_mode = #tpu.pipeline_mode<synchronous>, transform_indices = @transform_4, window_bounds = array<i64: 32, 32>}, {pipeline_mode = #tpu.pipeline_mode<synchronous>, transform_indices = @transform_5, window_bounds = array<i64: 1, 32>}, {transform_indices = @transform_6, window_bounds = array<i64: 1, 8, 32>}]} {
    %c0 = arith.constant 0 : index
    %c0_0 = arith.constant 0 : index
    %c0_1 = arith.constant 0 : index
    %0 = vector.load %arg1[%c0, %c0_0, %c0_1] : memref<1x8x32xf32, #tpu.memory_space<vmem>>, vector<1x8x32xf32>
    %1 = vector.shape_cast %0 : vector<1x8x32xf32> to vector<8x32xf32>
    %c0_2 = arith.constant 0 : index
    %c0_3 = arith.constant 0 : index
    %2 = vector.load %arg2[%c0_2, %c0_3] : memref<32x32xf32, #tpu.memory_space<vmem>>, vector<32x32xf32>
    %cst = arith.constant dense<0.000000e+00> : vector<8x32xf32>
    %3 = tpu.matmul %1, %2, %cst {dimension_numbers = #tpu.dot_dimension_numbers<[1], [0], [0], [1], [0, 0, 1, 1], [], []>} : vector<8x32xf32>, vector<32x32xf32>, vector<8x32xf32> -> vector<8x32xf32>
    %cst_4 = arith.constant 2.82842708 : f32
    %4 = vector.broadcast %cst_4 : f32 to vector<8x32xf32>
    %5 = arith.mulf %3, %4 : vector<8x32xf32>
    %c0_5 = arith.constant 0 : index
    %c0_6 = arith.constant 0 : index
    %6 = vector.load %arg3[%c0_5, %c0_6] : memref<32x32xf32, #tpu.memory_space<vmem>>, vector<32x32xf32>
    %cst_7 = arith.constant dense<0.000000e+00> : vector<8x32xf32>
    %7 = tpu.matmul %1, %6, %cst_7 {dimension_numbers = #tpu.dot_dimension_numbers<[1], [0], [0], [1], [0, 0, 1, 1], [], []>} : vector<8x32xf32>, vector<32x32xf32>, vector<8x32xf32> -> vector<8x32xf32>
    %c0_8 = arith.constant 0 : index
    %c0_9 = arith.constant 0 : index
    %8 = vector.load %arg4[%c0_8, %c0_9] : memref<32x32xf32, #tpu.memory_space<vmem>>, vector<32x32xf32>
    %cst_10 = arith.constant dense<0.000000e+00> : vector<8x32xf32>
    %9 = tpu.matmul %1, %8, %cst_10 {dimension_numbers = #tpu.dot_dimension_numbers<[1], [0], [0], [1], [0, 0, 1, 1], [], []>} : vector<8x32xf32>, vector<32x32xf32>, vector<8x32xf32> -> vector<8x32xf32>
    %10 = tpu.iota {dimensions = array<i32: 0>} : vector<8x8xi32>
    %11 = tpu.iota {dimensions = array<i32: 1>} : vector<8x8xi32>
    %12 = arith.cmpi sle, %11, %10 : vector<8x8xi32>
    %13 = vector.extract_strided_slice %5 {offsets = [0, 0], sizes = [8, 8], strides = [1, 1]} : vector<8x32xf32> to vector<8x8xf32>
    %14 = vector.extract_strided_slice %7 {offsets = [0, 0], sizes = [8, 8], strides = [1, 1]} : vector<8x32xf32> to vector<8x8xf32>
    %15 = vector.extract_strided_slice %9 {offsets = [0, 0], sizes = [8, 8], strides = [1, 1]} : vector<8x32xf32> to vector<8x8xf32>
    %cst_11 = arith.constant dense<0.000000e+00> : vector<8x8xf32>
    %16 = tpu.matmul %13, %14, %cst_11 {dimension_numbers = #tpu.dot_dimension_numbers<[1], [1], [0], [0], [0, 0, 1, 0], [], []>} : vector<8x8xf32>, vector<8x8xf32>, vector<8x8xf32> -> vector<8x8xf32>
    %cst_12 = arith.constant -1.000000e+30 : f32
    %17 = vector.broadcast %cst_12 : f32 to vector<8x8xf32>
    %18 = arith.select %12, %16, %17 : vector<8x8xi1>, vector<8x8xf32>
    %cst_13 = arith.constant dense<0xFF800000> : vector<8xf32>
    %19 = vector.multi_reduction <maximumf>, %18, %cst_13 [1] : vector<8x8xf32> to vector<8xf32>
    %20 = vector.shape_cast %19 : vector<8xf32> to vector<8x1xf32>
    %21 = vector.broadcast %20 : vector<8x1xf32> to vector<8x8xf32>
    %22 = arith.subf %18, %21 : vector<8x8xf32>
    %23 = math.exp %22 : vector<8x8xf32>
    %cst_14 = arith.constant dense<0.000000e+00> : vector<8xf32>
    %24 = vector.multi_reduction <add>, %23, %cst_14 [1] : vector<8x8xf32> to vector<8xf32>
    %25 = vector.shape_cast %24 : vector<8xf32> to vector<8x1xf32>
    %26 = tpu.reciprocal %25 {approx = true} : vector<8x1xf32> -> vector<8x1xf32>
    %27 = vector.broadcast %26 : vector<8x1xf32> to vector<8x8xf32>
    %28 = arith.mulf %23, %27 : vector<8x8xf32>
    %cst_15 = arith.constant dense<0.000000e+00> : vector<8x8xf32>
    %29 = tpu.matmul %28, %15, %cst_15 {dimension_numbers = #tpu.dot_dimension_numbers<[1], [0], [0], [1], [0, 0, 1, 1], [], []>} : vector<8x8xf32>, vector<8x8xf32>, vector<8x8xf32> -> vector<8x8xf32>
    %30 = vector.extract_strided_slice %5 {offsets = [0, 8], sizes = [8, 8], strides = [1, 1]} : vector<8x32xf32> to vector<8x8xf32>
    %31 = vector.extract_strided_slice %7 {offsets = [0, 8], sizes = [8, 8], strides = [1, 1]} : vector<8x32xf32> to vector<8x8xf32>
    %32 = vector.extract_strided_slice %9 {offsets = [0, 8], sizes = [8, 8], strides = [1, 1]} : vector<8x32xf32> to vector<8x8xf32>
    %cst_16 = arith.constant dense<0.000000e+00> : vector<8x8xf32>
    %33 = tpu.matmul %30, %31, %cst_16 {dimension_numbers = #tpu.dot_dimension_numbers<[1], [1], [0], [0], [0, 0, 1, 0], [], []>} : vector<8x8xf32>, vector<8x8xf32>, vector<8x8xf32> -> vector<8x8xf32>
    %cst_17 = arith.constant -1.000000e+30 : f32
    %34 = vector.broadcast %cst_17 : f32 to vector<8x8xf32>
    %35 = arith.select %12, %33, %34 : vector<8x8xi1>, vector<8x8xf32>
    %cst_18 = arith.constant dense<0xFF800000> : vector<8xf32>
    %36 = vector.multi_reduction <maximumf>, %35, %cst_18 [1] : vector<8x8xf32> to vector<8xf32>
    %37 = vector.shape_cast %36 : vector<8xf32> to vector<8x1xf32>
    %38 = vector.broadcast %37 : vector<8x1xf32> to vector<8x8xf32>
    %39 = arith.subf %35, %38 : vector<8x8xf32>
    %40 = math.exp %39 : vector<8x8xf32>
    %cst_19 = arith.constant dense<0.000000e+00> : vector<8xf32>
    %41 = vector.multi_reduction <add>, %40, %cst_19 [1] : vector<8x8xf32> to vector<8xf32>
    %42 = vector.shape_cast %41 : vector<8xf32> to vector<8x1xf32>
    %43 = tpu.reciprocal %42 {approx = true} : vector<8x1xf32> -> vector<8x1xf32>
    %44 = vector.broadcast %43 : vector<8x1xf32> to vector<8x8xf32>
    %45 = arith.mulf %40, %44 : vector<8x8xf32>
    %cst_20 = arith.constant dense<0.000000e+00> : vector<8x8xf32>
    %46 = tpu.matmul %45, %32, %cst_20 {dimension_numbers = #tpu.dot_dimension_numbers<[1], [0], [0], [1], [0, 0, 1, 1], [], []>} : vector<8x8xf32>, vector<8x8xf32>, vector<8x8xf32> -> vector<8x8xf32>
    %47 = vector.extract_strided_slice %5 {offsets = [0, 16], sizes = [8, 8], strides = [1, 1]} : vector<8x32xf32> to vector<8x8xf32>
    %48 = vector.extract_strided_slice %7 {offsets = [0, 16], sizes = [8, 8], strides = [1, 1]} : vector<8x32xf32> to vector<8x8xf32>
    %49 = vector.extract_strided_slice %9 {offsets = [0, 16], sizes = [8, 8], strides = [1, 1]} : vector<8x32xf32> to vector<8x8xf32>
    %cst_21 = arith.constant dense<0.000000e+00> : vector<8x8xf32>
    %50 = tpu.matmul %47, %48, %cst_21 {dimension_numbers = #tpu.dot_dimension_numbers<[1], [1], [0], [0], [0, 0, 1, 0], [], []>} : vector<8x8xf32>, vector<8x8xf32>, vector<8x8xf32> -> vector<8x8xf32>
    %cst_22 = arith.constant -1.000000e+30 : f32
    %51 = vector.broadcast %cst_22 : f32 to vector<8x8xf32>
    %52 = arith.select %12, %50, %51 : vector<8x8xi1>, vector<8x8xf32>
    %cst_23 = arith.constant dense<0xFF800000> : vector<8xf32>
    %53 = vector.multi_reduction <maximumf>, %52, %cst_23 [1] : vector<8x8xf32> to vector<8xf32>
    %54 = vector.shape_cast %53 : vector<8xf32> to vector<8x1xf32>
    %55 = vector.broadcast %54 : vector<8x1xf32> to vector<8x8xf32>
    %56 = arith.subf %52, %55 : vector<8x8xf32>
    %57 = math.exp %56 : vector<8x8xf32>
    %cst_24 = arith.constant dense<0.000000e+00> : vector<8xf32>
    %58 = vector.multi_reduction <add>, %57, %cst_24 [1] : vector<8x8xf32> to vector<8xf32>
    %59 = vector.shape_cast %58 : vector<8xf32> to vector<8x1xf32>
    %60 = tpu.reciprocal %59 {approx = true} : vector<8x1xf32> -> vector<8x1xf32>
    %61 = vector.broadcast %60 : vector<8x1xf32> to vector<8x8xf32>
    %62 = arith.mulf %57, %61 : vector<8x8xf32>
    %cst_25 = arith.constant dense<0.000000e+00> : vector<8x8xf32>
    %63 = tpu.matmul %62, %49, %cst_25 {dimension_numbers = #tpu.dot_dimension_numbers<[1], [0], [0], [1], [0, 0, 1, 1], [], []>} : vector<8x8xf32>, vector<8x8xf32>, vector<8x8xf32> -> vector<8x8xf32>
    %64 = vector.extract_strided_slice %5 {offsets = [0, 24], sizes = [8, 8], strides = [1, 1]} : vector<8x32xf32> to vector<8x8xf32>
    %65 = vector.extract_strided_slice %7 {offsets = [0, 24], sizes = [8, 8], strides = [1, 1]} : vector<8x32xf32> to vector<8x8xf32>
    %66 = vector.extract_strided_slice %9 {offsets = [0, 24], sizes = [8, 8], strides = [1, 1]} : vector<8x32xf32> to vector<8x8xf32>
    %cst_26 = arith.constant dense<0.000000e+00> : vector<8x8xf32>
    %67 = tpu.matmul %64, %65, %cst_26 {dimension_numbers = #tpu.dot_dimension_numbers<[1], [1], [0], [0], [0, 0, 1, 0], [], []>} : vector<8x8xf32>, vector<8x8xf32>, vector<8x8xf32> -> vector<8x8xf32>
    %cst_27 = arith.constant -1.000000e+30 : f32
    %68 = vector.broadcast %cst_27 : f32 to vector<8x8xf32>
    %69 = arith.select %12, %67, %68 : vector<8x8xi1>, vector<8x8xf32>
    %cst_28 = arith.constant dense<0xFF800000> : vector<8xf32>
    %70 = vector.multi_reduction <maximumf>, %69, %cst_28 [1] : vector<8x8xf32> to vector<8xf32>
    %71 = vector.shape_cast %70 : vector<8xf32> to vector<8x1xf32>
    %72 = vector.broadcast %71 : vector<8x1xf32> to vector<8x8xf32>
    %73 = arith.subf %69, %72 : vector<8x8xf32>
    %74 = math.exp %73 : vector<8x8xf32>
    %cst_29 = arith.constant dense<0.000000e+00> : vector<8xf32>
    %75 = vector.multi_reduction <add>, %74, %cst_29 [1] : vector<8x8xf32> to vector<8xf32>
    %76 = vector.shape_cast %75 : vector<8xf32> to vector<8x1xf32>
    %77 = tpu.reciprocal %76 {approx = true} : vector<8x1xf32> -> vector<8x1xf32>
    %78 = vector.broadcast %77 : vector<8x1xf32> to vector<8x8xf32>
    %79 = arith.mulf %74, %78 : vector<8x8xf32>
    %cst_30 = arith.constant dense<0.000000e+00> : vector<8x8xf32>
    %80 = tpu.matmul %79, %66, %cst_30 {dimension_numbers = #tpu.dot_dimension_numbers<[1], [0], [0], [1], [0, 0, 1, 1], [], []>} : vector<8x8xf32>, vector<8x8xf32>, vector<8x8xf32> -> vector<8x8xf32>
    %81 = tpu.concatenate %29, %46, %63, %80 in 1 : vector<8x8xf32>, vector<8x8xf32>, vector<8x8xf32>, vector<8x8xf32> -> vector<8x32xf32>
    %c0_31 = arith.constant 0 : index
    %c0_32 = arith.constant 0 : index
    %82 = vector.load %arg5[%c0_31, %c0_32] : memref<32x32xf32, #tpu.memory_space<vmem>>, vector<32x32xf32>
    %cst_33 = arith.constant dense<0.000000e+00> : vector<8x32xf32>
    %83 = tpu.matmul %81, %82, %cst_33 {dimension_numbers = #tpu.dot_dimension_numbers<[1], [0], [0], [1], [0, 0, 1, 1], [], []>} : vector<8x32xf32>, vector<32x32xf32>, vector<8x32xf32> -> vector<8x32xf32>
    %c0_34 = arith.constant 0 : index
    %c0_35 = arith.constant 0 : index
    %84 = vector.load %arg6[%c0_34, %c0_35] : memref<1x32xf32, #tpu.memory_space<vmem>>, vector<1x32xf32>
    %85 = vector.broadcast %84 : vector<1x32xf32> to vector<8x32xf32>
    %86 = arith.addf %83, %85 : vector<8x32xf32>
    %87 = vector.shape_cast %86 : vector<8x32xf32> to vector<1x8x32xf32>
    %c0_36 = arith.constant 0 : index
    %c0_37 = arith.constant 0 : index
    %c0_38 = arith.constant 0 : index
    %88 = vector.load %arg7[%c0_36, %c0_37, %c0_38] : memref<1x8x32xf32, #tpu.memory_space<vmem>>, vector<1x8x32xf32>
    tpu.vector_store %arg7[%c0_36, %c0_37, %c0_38], %87 {strides = array<i32>} : memref<1x8x32xf32, #tpu.memory_space<vmem>>, vector<1x8x32xf32>,
    return
  }
  func.func @transform_0(%arg0: i32) -> (i32, i32, i32) {
    %c0_i32 = arith.constant 0 : i32
    %c0_i32_0 = arith.constant 0 : i32
    %c0_i32_1 = arith.constant 0 : i32
    return %arg0, %c0_i32, %c0_i32_0 : i32, i32, i32
  }
  func.func @transform_1(%arg0: i32) -> (i32, i32) {
    %c0_i32 = arith.constant 0 : i32
    %c0_i32_0 = arith.constant 0 : i32
    %c0_i32_1 = arith.constant 0 : i32
    return %c0_i32, %c0_i32_0 : i32, i32
  }
  func.func @transform_2(%arg0: i32) -> (i32, i32) {
    %c0_i32 = arith.constant 0 : i32
    %c0_i32_0 = arith.constant 0 : i32
    %c0_i32_1 = arith.constant 0 : i32
    return %c0_i32, %c0_i32_0 : i32, i32
  }
  func.func @transform_3(%arg0: i32) -> (i32, i32) {
    %c0_i32 = arith.constant 0 : i32
    %c0_i32_0 = arith.constant 0 : i32
    %c0_i32_1 = arith.constant 0 : i32
    return %c0_i32, %c0_i32_0 : i32, i32
  }
  func.func @transform_4(%arg0: i32) -> (i32, i32) {
    %c0_i32 = arith.constant 0 : i32
    %c0_i32_0 = arith.constant 0 : i32
    %c0_i32_1 = arith.constant 0 : i32
    return %c0_i32, %c0_i32_0 : i32, i32
  }
  func.func @transform_5(%arg0: i32) -> (i32, i32) {
    %c0_i32 = arith.constant 0 : i32
    %c0_i32_0 = arith.constant 0 : i32
    %c0_i32_1 = arith.constant 0 : i32
    return %c0_i32, %c0_i32_0 : i32, i32
  }
  func.func @transform_6(%arg0: i32) -> (i32, i32, i32) {
    %c0_i32 = arith.constant 0 : i32
    %c0_i32_0 = arith.constant 0 : i32
    %c0_i32_1 = arith.constant 0 : i32
    return %arg0, %c0_i32, %c0_i32_0 : i32, i32, i32
  }
}

</mosaic_0001>

<bundles_post_ra>
// kernel: tpu_custom_call.1
= control target key start
LH: loop header
LB: loop body
LE: loop exit
PB: predicated region body
PF: predicated region fallthrough
CT: control target
= control target key end

     0   :  { %s1486_s0 = inlined_call_operand.hbm [shape: f32[2,8,32], index: 0, kind: input, shape index: {}]   ;;  %s1487_s1 = inlined_call_operand.hbm [shape: f32[32,32], index: 1, kind: input, shape index: {}]   ;;  %s1488_s2 = inlined_call_operand.hbm [shape: f32[32,32], index: 2, kind: input, shape index: {}]   ;;  %s1489_s3 = inlined_call_operand.hbm [shape: f32[32,32], index: 3, kind: input, shape index: {}]   ;;  %s1490_s4 = inlined_call_operand.hbm [shape: f32[32,32], index: 4, kind: input, shape index: {}]   ;;  %s1491_s5 = inlined_call_operand.vmem [shape: f32[1,32], index: 5, kind: input, shape index: {}]   ;;  %s1492_s6 = inlined_call_operand.hbm [shape: f32[2,8,32], index: 6, kind: output, shape index: {}]  }
   0x1   :  { %1493 = sst [smem:[#allocation16_spill]] %s1487_s1 }
   0x2   :  { %11 = vsyncpa [#allocation3], 0 }
   0x3   :  { %13 = vsyncpa [#allocation3 + $0x1], 0 }
   0x4   :  { %14 = vsyncpa [#allocation6], 0 }
   0x5   :  { %15 = vsyncpa [#allocation9], 0 }
   0x6   :  { %16 = vsyncpa [#allocation4], 0 }
   0x7   :  { %18 = vsyncpa [#allocation4 + $0x1], 0  ;;  %s1273_s21 = smov 0   ;;  %s1275_s22 = smov 0  }
   0x8   :  { %s1277_s23 = smov 0   ;;  %s1279_s24 = smov 0  }
   0x9 LB: > { %s1494_s1 = sld [smem:[#allocation16_spill]]  ;;  %s1297_s28 = sadd.s32 4294967295, %s1224_s24   ;;  %s1224_s24 = sphi %s1279_s24, %s1506_s24   ;;  %s1220_s23 = sphi %s1277_s23, %s1505_s23   ;;  %s1216_s22 = sphi %s1275_s22, %s1504_s22   ;;  %s1212_s21 = sphi %s1273_s21, %s1503_s21  }
   0xa   : > { %p853_p0 = scmp.ge.s32.totalorder %s1224_s24, 1  ;;  %p45_p1 = scmp.eq.s32.totalorder %s1297_s28, 0 }
   0xb   : > { %p186_p2 = scmp.lt.s32.totalorder %s1224_s24, 3  ;;  %s1226_s30 = smov [#allocation5]  }
   0xc   : > { %s199_s7 = sshll.u32 %s1226_s30, 4  ;;  %s225_s10 = sshll.u32 %s1489_s3, 4  ;;  %s200_s7 = int_to_ptr.vmem [resolvable:$true] %s199_s7  ;;  %s226_s10 = int_to_ptr.hbm [resolvable:$true] %s225_s10 }
   0xd   : > { %p1302_p3 = pnand %p853_p0, %p186_p2  ;;  %s211_s14 = sshll.u32 %s1488_s2, 4  ;;  %s212_s14 = int_to_ptr.hbm [resolvable:$true] %s211_s14 }
   0xe   : > { %s1227_s15 = smov [#allocation8]   ;;  %s1228_s17 = smov 128  }
   0xf   : > { %s197_s27 = sshll.u32 %s1494_s1, 4  ;;  %p908_p4 = pneg %p1302_p3  ;;  %s198_s27 = int_to_ptr.hbm [resolvable:$true] %s197_s27 }
  0x10   : > { %s227_s16 = sshll.u32 %s1227_s15, 4  ;;  %s1229_s18 = smov 8   ;;  %s228_s16 = int_to_ptr.vmem [resolvable:$true] %s227_s16 }
  0x11   : > { %p1314_p6 = pnand %p908_p4, %p45_p1  ;;  %s239_s25 = sshll.u32 %s1490_s4, 4  ;;  %s240_s25 = int_to_ptr.hbm [resolvable:$true] %s239_s25 }
  0x12   : > { %s1230_s26 = smov [#allocation7]   ;;  %s852_s8 = sadd.s32 4294967294, %s1224_s24  }
  0x13   : > { %911 = dma.hbm_to_vmem [thread:$0]  (!%p1314_p6), %s198_s27, 512, %s200_s7, [#allocation6], %s1228_s17, %s1228_s17, %s1229_s18  }
  0x14   : > { %917 = dma.hbm_to_vmem [thread:$0]  (!%p1314_p6), %s226_s10, 512, %s228_s16, [#allocation9], %s1228_s17, %s1228_s17, %s1229_s18  }
  0x15   : > { %s213_s30 = sshll.u32 %s1230_s26, 4  ;;  %s1231_s27 = smov [#allocation10]   ;;  %s214_s30 = int_to_ptr.vmem [resolvable:$true] %s213_s30 }
  0x16   : > { %914 = dma.hbm_to_vmem [thread:$0]  (!%p1314_p6), %s212_s14, 512, %s214_s30, [#allocation6], %s1228_s17, %s1228_s17, %s1229_s18  }
  0x17   : > { %s241_s7 = sshll.u32 %s1231_s27, 4  ;;  %s1334_s9 = sadd.s32 1, %s1224_s24   ;;  %s242_s7 = int_to_ptr.vmem [resolvable:$true] %s241_s7 }
  0x18   : > { %920 = dma.hbm_to_vmem [thread:$0]  (!%p1314_p6), %s240_s25, 512, %s242_s7, [#allocation9], %s1228_s17, %s1228_s17, %s1229_s18  }
  0x19   : > { %s28_s10 = ssub.s32 %s1224_s24, %s1334_s9  ;;  %s31_s12 = sadd.s32 1, %s1220_s23 }
  0x1a   : > { %p29_p7 = scmp.eq.s32.totalorder %s28_s10, 0  ;;  %p38_p8 = scmp.ne.s32.totalorder %s1220_s23, %s1216_s22 }
  0x1b   : > { %p39_p9 = scmp.eq.s32.totalorder %s1224_s24, 0  ;;  %p44_p10 = scmp.ne.s32.totalorder %s1216_s22, %s1212_s21 }
  0x1c   : > { %s1345_s13 = scalar_select %p29_p7, %s1220_s23, %s31_s12  }
  0x1d   : > { %p1347_p11 = por %p39_p9, %p38_p8  ;;  %p1353_p12 = por %p45_p1, %p44_p10 }
  0x1e   : > { %p173_p13 = scmp.eq.s32.totalorder %s1297_s28, 1  ;;  %p179_p0 = scmp.eq.s32.totalorder %s852_s8, 1 }
  0x1f   : > { %p933_p2 = scmp.lt.s32.totalorder %s1224_s24, 2  ;;  %s258_s15 = sand.u32 1, %s1220_s23  }
  0x20   : > { %p1360_p4 = por %p173_p13, %p38_p8  ;;  %p1364_p6 = por %p179_p0, %p44_p10 }
  0x21   : > { %s859_s18 = sshll.u32 %s258_s15, 3  ;;  %s860_s19 = sshll.u32 %s1224_s24, 3 }
  0x22   : > { %s266_s26 = scalar_lea.hbm %s1486_s0, %s860_s19  ;;  %s262_s30 = scalar_lea.vmem [#allocation2], %s859_s18 }
  0x23   : > { %s270_s27 = sshll.u32 %s262_s30, 4  ;;  %s268_s7 = sshll.u32 %s266_s26, 4  ;;  %s271_s27 = int_to_ptr.vmem [resolvable:$true] %s270_s27  ;;  %s269_s7 = int_to_ptr.hbm [resolvable:$true] %s268_s7 }
  0x24   : > { %p1374_p7 = pnand %p933_p2, %p1347_p11  ;;  %s259_s10 = scalar_lea.sflag [#allocation3], %s258_s15 }
  0x25   : > { %s1120_s12 = sshra.s32 %s269_s7, 4  ;;  %s1127_s20 = scalar_lea.hbm %s1486_s0, 16  ;;  %s1121_s12 = int_to_ptr.hbm [resolvable:$true] %s1120_s12 }
  0x26   : > { %s1122_s1 = scalar_lea.hbm %s1121_s12, 8  ;;  %p1124_p9 = pneg %p1374_p7 }
  0x27   : > { %p1123_p8 = scmp.ne.s32.totalorder %s1121_s12, %s1122_s1  ;;  %p1128_p11 = scmp.lt.s32.totalorder %s1121_s12, %s1486_s0 }
  0x28   : > { %p1129_p0 = scmp.lt.s32.totalorder %s1127_s20, %s1122_s1 }
  0x29   : > { %p1125_p10 = pnand %p1124_p9, %p1123_p8 }
  0x2a   : > { %p1130_p2 = por %p1129_p0, %p1128_p11 }
  0x2b   : > { %p1126_p13 = pneg %p1125_p10 }
  0x2d   : > { %p1131_p5 = pnand %p1130_p2, %p1126_p13 }
  0x2f   : > { %1134 = shalt.err (!%p1131_p5)
}
  0x30   : > { %924 = dma.hbm_to_vmem [thread:$0]  (!%p1374_p7), %s269_s7, 128, %s271_s27, %s259_s10  }
  0x31   : > { %279 = sbr.rel (%p1302_p3) target bundleno = 1094 (0x446), region = 44  ;;  %s1391_s15 = sand.u32 (!%p1302_p3), 1, %s1216_s22  }
  0x32   : > { %s862_s26 = sshll.u32 (!%p1302_p3), %s1391_s15, 3  ;;  %s282_s30 = scalar_lea.sflag (!%p1302_p3), [#allocation3], %s1391_s15 }
  0x33   : > { %s285_s1 = scalar_lea.vmem (!%p1302_p3), [#allocation2], %s862_s26 }
  0x36   : > { %1195 = dma.done.wait (%p1353_p12), %s282_s30, 128  }
  0x37   : > { %1197 = vsyncadd (%p1353_p12), %s282_s30, 4294967168 }
  0x38   : > { %1199 = dma.done.wait (%p45_p1), [#allocation6], 1024  }
  0x39   : > { %1201 = vsyncadd (%p45_p1), [#allocation6], 4294966272 }
  0x3a   : > { %1203 = dma.done.wait (%p45_p1), [#allocation9], 1024  }
  0x3b   : > { %1205 = vsyncadd (%p45_p1), [#allocation9], 4294966272  ;;  %v368_v0 = vld [vmem:[#allocation7 + $0x18] sm:$0xff]  ;;  %v367_v2 = vld [vmem:[#allocation7 + $0x10] sm:$0xff]  ;;  %vm340_vm0 = vcmask 261120   ;;  %vm418_vm1 = vcmask 64512   ;;  %v413_v21 = vlaneseq }
  0x3c   : > { %v339_v1 = vld [vmem:[#allocation5 + $0x18] sm:$0xff]  ;;  %381 = vmatpush.msra.mxu1 %v368_v0  ;;  %v338_v3 = vld [vmem:[#allocation5 + $0x10] sm:$0xff]  ;;  %v366_v4 = vld [vmem:[#allocation7 + $0x8] sm:$0xff]  ;;  %s1232_s29 = smov 104   ;;  %s1233_s11 = smov 120   ;;  %vm692_vm3 = vcmask 130048  }
  0x3d   : > { %356 = vmatpush.msra.mxu0 %v339_v1  ;;  %v337_v5 = vld [vmem:[#allocation5 + $0x8] sm:$0xff]  ;;  %v365_v6 = vld [vmem:[#allocation7] sm:$0xff]  ;;  %v335_v8 = vld [vmem:[%s285_s1] sm:$0xff]  ;;  %s1234_s27 = smov 112   ;;  %v414_v22 = vshrl.u32 %v413_v21, 7  ;;  %v416_v23 = vand.u32 127, %v413_v21 }
  0x3e   : > { %382 = vmatpush.msra.mxu1 %v367_v2  ;;  %v336_v7 = vld [vmem:[#allocation5] sm:$0xff]  ;;  %v392_v12 = vld [vmem:[#allocation8 + $0x18] sm:$0xff]  ;;  %v391_v13 = vld [vmem:[#allocation8 + $0x10] sm:$0xff]  ;;  %s1235_s7 = smov 16   ;;  %s1236_s8 = smov 8   ;;  %vm694_vm4 = vcmask 195584  }
  0x3f   : > { %357 = vmatpush.msra.mxu0 %v338_v3  ;;  %405 = vmatpush.msra.mxu2 %v392_v12  ;;  %v390_v14 = vld [vmem:[#allocation8 + $0x8] sm:$0xff]  ;;  %v389_v15 = vld [vmem:[#allocation8] sm:$0xff]  ;;  %vm417_vm2 = vcmp.le.s32.totalorder %v416_v23, %v414_v22  ;;  %s1237_s10 = smov 24   ;;  %s885_s12 = sshll.u32 %s1297_s28, 3  ;;  %v983_v23 = vld [vmem:[%s1491_s5] ss:$0 sm:$0xff] }
  0x40   : > { %383 = vmatpush.msra.mxu1 %v366_v4  ;;  %s739_s20 = scalar_lea.hbm %s1492_s6, %s885_s12  ;;  %s334_s30 = scalar_lea.vmem [#allocation11], %s862_s26 }
  0x41   : > { %358 = vmatpush.msra.mxu0 %v337_v5  ;;  %406 = vmatpush.msra.mxu2 %v391_v13  ;;  %v699_v13 = vld [vmem:[#allocation10 + $0x18] sm:$0xff]  ;;  %s741_s1 = sshll.u32 %s334_s30, 4  ;;  %s729_s28 = scalar_lea.sflag [#allocation4], %s1391_s15  ;;  %s742_s1 = int_to_ptr.vmem [resolvable:$true] %s741_s1 }
  0x42   : > { %384 = vmatpush.msra.mxu1 %v365_v6  ;;  %s1170_s26 = scalar_lea.hbm %s1492_s6, 16 }
  0x43   : > { %359 = vmatpush.msra.mxu0 %v336_v7  ;;  %869 = vmatmul.msk.f32.vlgmr.msra.gmra.mxu1 %vm340_vm0, %v335_v8 }
  0x44   : > { %868 = vmatmul.msk.f32.vlgmr.msra.gmra.mxu0 %vm340_vm0, %v335_v8  ;;  %407 = vmatpush.msra.mxu2 %v390_v14  ;;  %v698_v14 = vld [vmem:[#allocation10 + $0x10] sm:$0xff] }
  0x46   : > { %408 = vmatpush.msra.mxu2 %v389_v15  ;;  %v697_v15 = vld [vmem:[#allocation10 + $0x8] sm:$0xff] }
  0x47   : > { %870 = vmatmul.msk.f32.vlgmr.msra.gmra.mxu2 %vm340_vm0, %v335_v8 }
  0xc0   : > { %v386_v9 = vpop.f32.mrf.mxu1 }
  0xc1   : > { %v361_v10 = vpop.f32.mrf.mxu0  ;;  %615 = vrot.lane.b32.xlu2 %v386_v9, %s1232_s29  ;;  %482 = vrot.lane.b32.xlu1 %v386_v9, %s1233_s11 }
  0xc2   : > { %v364_v11 = vmul.f32 2.828427, %v361_v10  ;;  %549 = vrot.lane.b32.xlu0 %v386_v9, %s1234_s27  ;;  %871 = vmatpush.xpose.msk.msra.mxu3 %vm418_vm1, %v386_v9 }
  0xc5   : > { %872 = vmatmul.msk.f32.vlgmr.msra.gmra.mxu3 %vm418_vm1, %v364_v11 }
  0xc9   : > { %613 = vrot.lane.b32.xlu2 %v364_v11, %s1232_s29  ;;  %480 = vrot.lane.b32.xlu1 %v364_v11, %s1233_s11 }
  0xca   : > { %547 = vrot.lane.b32.xlu0 %v364_v11, %s1234_s27  ;;  %v410_v28 = vpop.f32.mrf.mxu2 }
  0xcb   : > { %475 = vmatpush.msrb.mxu3 %v410_v28 }
 0x11b   : > { %v616_v17 = vpop.permute.xlu2 %615 }
 0x123   : > { %v614_v24 = vpop.permute.xlu2 %613 }
 0x133   : > { %v483_v16 = vpop.permute.xlu1 %482 }
 0x134   : > { %v550_v18 = vpop.permute.xlu0 %549  ;;  %874 = vmatpush.xpose.msk.msrb.mxu0 %vm418_vm1, %v483_v16  ;;  %v696_v16 = vld [vmem:[#allocation10] sm:$0xff] }
 0x135   : > { %877 = vmatpush.xpose.msk.msrb.mxu2 %vm418_vm1, %v550_v18 }
 0x138   : > { %880 = vmatpush.xpose.msk.msra.mxu0 %vm418_vm1, %v616_v17 }
 0x139   : > { %719 = vmatpush.msra.mxu2 %v699_v13 }
 0x13b   : > { %v481_v19 = vpop.permute.xlu1 %480  ;;  %720 = vmatpush.msra.mxu2 %v698_v14 }
 0x13c   : > { %v548_v20 = vpop.permute.xlu0 %547  ;;  %875 = vmatmul.msk.f32.vlgmr.msrb.gmra.mxu0 %vm418_vm1, %v481_v19 }
 0x13d   : > { %878 = vmatmul.msk.f32.vlgmr.msrb.gmra.mxu2 %vm418_vm1, %v548_v20 }
 0x13e   : > { %721 = vmatpush.msra.mxu2 %v697_v15 }
 0x140   : > { %722 = vmatpush.msra.mxu2 %v696_v16 }
 0x144   : > { %881 = vmatmul.msk.f32.vlgmr.msra.gmra.mxu0 %vm418_vm1, %v614_v24 }
 0x148   : > { %v442_v25 = vpop.f32.mrf.mxu3 }
 0x149   : > { %v445_v26 = vsel %vm417_vm2, %v442_v25, -1e+30 }
 0x14a   : > { %v446_v27 = vsel %vm418_vm1, %v445_v26, -inf }
 0x14b   : > { %447 = vmax.xlane.f32.xlu0 %v446_v27 }
 0x1b9   : > { %v505_v29 = vpop.f32.mrf.mxu0 }
 0x1ba   : > { %v508_v30 = vsel %vm417_vm2, %v505_v29, -1e+30 }
 0x1bb   : > { %v509_v31 = vsel %vm418_vm1, %v508_v30, -inf }
 0x1bc   : > { %510 = vmax.xlane.f32.xlu1 %v509_v31 }
 0x1be   : > { %v448_v32 = vpop.xlane.xlu0 %447 }
 0x1bf   : > { %v449_v33 = vsub.f32 %v445_v26, %v448_v32 }
 0x1c0   : > { %v572_v34 = vpop.f32.mrf.mxu2 }
 0x1c1   : > { %v450_v35 = vmul.f32 1.442695, %v449_v33  ;;  %v575_v36 = vsel %vm417_vm2, %v572_v34, -1e+30  ;;  %v638_v38 = vpop.f32.mrf.mxu0 }
 0x1c2   : > { %v576_v37 = vsel %vm418_vm1, %v575_v36, -inf  ;;  %v641_v39 = vsel %vm417_vm2, %v638_v38, -1e+30 }
 0x1c3   : > { %984 = vpow2.f32 %v450_v35  ;;  %577 = vmax.xlane.f32.xlu2 %v576_v37  ;;  %v642_v41 = vsel %vm418_vm1, %v641_v39, -inf }
 0x1c9   : > { %v985_v40 = vpop.eup %984 }
 0x1ca   : > { %v452_v42 = vsel %vm418_vm1, %v985_v40, 0.0 }
 0x1cb   : > { %643 = vmax.xlane.f32.xlu2 %v642_v41  ;;  %453 = vadd.xlane.f32.xlu0 %v452_v42 }
 0x22f   : > { %v511_v43 = vpop.xlane.xlu1 %510 }
 0x230   : > { %v512_v44 = vsub.f32 %v508_v30, %v511_v43 }
 0x232   : > { %v513_v45 = vmul.f32 1.442695, %v512_v44 }
 0x234   : > { %986 = vpow2.f32 %v513_v45 }
 0x236   : > { %v578_v46 = vpop.xlane.xlu2 %577 }
 0x237   : > { %v579_v47 = vsub.f32 %v575_v36, %v578_v46 }
 0x239   : > { %v580_v48 = vmul.f32 1.442695, %v579_v47 }
 0x23a   : > { %v987_v49 = vpop.eup %986 }
 0x23b   : > { %988 = vpow2.f32 %v580_v48  ;;  %v515_v50 = vsel %vm418_vm1, %v987_v49, 0.0 }
 0x23c   : > { %516 = vadd.xlane.f32.xlu1 %v515_v50 }
 0x23e   : > { %v644_v51 = vpop.xlane.xlu2 %643  ;;  %v454_v52 = vpop.xlane.xlu0 %453 }
 0x23f   : > { %v645_v53 = vsub.f32 %v641_v39, %v644_v51  ;;  %990 = vrcp.f32 %v454_v52 }
 0x241   : > { %v989_v54 = vpop.eup %988  ;;  %v646_v55 = vmul.f32 1.442695, %v645_v53 }
 0x242   : > { %v582_v56 = vsel %vm418_vm1, %v989_v54, 0.0 }
 0x243   : > { %992 = vpow2.f32 %v646_v55  ;;  %583 = vadd.xlane.f32.xlu2 %v582_v56 }
 0x245   : > { %v991_v57 = vpop.eup %990 }
 0x246   : > { %v456_v58 = vmul.f32 %v991_v57, %v985_v40 }
 0x248   : > { %873 = vmatmul.msk.f32.vlgmr.msrb.gmra.mxu3 %vm418_vm1, %v456_v58 }
 0x249   : > { %v993_v59 = vpop.eup %992 }
 0x24a   : > { %v648_v60 = vsel %vm418_vm1, %v993_v59, 0.0 }
 0x24b   : > { %649 = vadd.xlane.f32.xlu0 %v648_v60 }
 0x255   : > { %521 = vrot.lane.b32.xlu1 %v410_v28, %s1233_s11 }
 0x25b   : > { %587 = vrot.lane.b32.xlu2 %v410_v28, %s1234_s27 }
 0x25f   : > { %653 = vrot.lane.b32.xlu0 %v410_v28, %s1232_s29  ;;  %s743_s29 = sshll.u32 %s739_s20, 4  ;;  %s744_s29 = int_to_ptr.hbm [resolvable:$true] %s743_s29 }
 0x260   : > { %s1164_s11 = sshra.s32 %s744_s29, 4  ;;  %s1165_s11 = int_to_ptr.hbm [resolvable:$true] %s1164_s11 }
 0x261   : > { %s1166_s27 = scalar_lea.hbm %s1165_s11, 8  ;;  %p1171_p12 = scmp.lt.s32.totalorder %s1165_s11, %s1492_s6 }
 0x262   : > { %p1167_p1 = scmp.ne.s32.totalorder %s1165_s11, %s1166_s27  ;;  %p1172_p7 = scmp.lt.s32.totalorder %s1170_s26, %s1166_s27 }
 0x264   : > { %p1168_p3 = pnand %p1167_p1, %p1360_p4  ;;  %p1173_p8 = por %p1172_p7, %p1171_p12 }
 0x266   : > { %p1169_p5 = pneg %p1168_p3 }
 0x268   : > { %p1174_p9 = pnand %p1173_p8, %p1169_p5 }
 0x2af   : > { %v517_v62 = vpop.xlane.xlu1 %516 }
 0x2b6   : > { %v584_v61 = vpop.xlane.xlu2 %583 }
 0x2b7   : > { %994 = vrcp.f32 %v584_v61 }
 0x2b8   : > { %996 = vrcp.f32 %v517_v62 }
 0x2bd   : > { %v995_v63 = vpop.eup %994 }
 0x2be   : > { %v586_v0 = vmul.f32 %v995_v63, %v989_v54  ;;  %v588_v1 = vpop.permute.xlu2 %587  ;;  %v997_v2 = vpop.eup %996 }
 0x2bf   : > { %608 = vmatpush.msra.mxu3 %v588_v1  ;;  %v650_v3 = vpop.xlane.xlu0 %649  ;;  %v519_v5 = vmul.f32 %v997_v2, %v987_v49 }
 0x2c0   : > { %879 = vmatmul.msk.f32.vlgmr.msra.gmra.mxu3 %vm418_vm1, %v586_v0  ;;  %998 = vrcp.f32 %v650_v3 }
 0x2c6   : > { %v999_v6 = vpop.eup %998 }
 0x2c7   : > { %v522_v4 = vpop.permute.xlu1 %521  ;;  %v652_v7 = vmul.f32 %v999_v6, %v993_v59 }
 0x2c8   : > { %542 = vmatpush.msrb.mxu1 %v522_v4 }
 0x2c9   : > { %876 = vmatmul.msk.f32.vlgmr.msrb.gmra.mxu1 %vm418_vm1, %v519_v5 }
 0x2cb   : > { %v477_v9 = vpop.f32.mrf.mxu3 }
 0x2d1   : > { %v654_v8 = vpop.permute.xlu0 %653 }
 0x2d2   : > { %674 = vmatpush.msra.mxu1 %v654_v8 }
 0x2d3   : > { %882 = vmatmul.msk.f32.vlgmr.msra.gmra.mxu1 %vm418_vm1, %v652_v7 }
 0x343   : > { %v610_v10 = vpop.f32.mrf.mxu3 }
 0x344   : > { %684 = vrot.lane.b32.xlu0 %v610_v10, %s1235_s7 }
 0x346   : > { %v544_v11 = vpop.f32.mrf.mxu1 }
 0x347   : > { %680 = vrot.lane.b32.xlu1 %v544_v11, %s1236_s8 }
 0x350   : > { %v676_v12 = vpop.f32.mrf.mxu1 }
 0x351   : > { %688 = vrot.lane.b32.xlu2 %v676_v12, %s1237_s10 }
 0x3ab   : > { %v689_v20 = vpop.permute.xlu2 %688 }
 0x3b6   : > { %v685_v18 = vpop.permute.xlu0 %684 }
 0x3b9   : > { %v681_v17 = vpop.permute.xlu1 %680 }
 0x3ba   : > { %v691_v19 = vsel %vm418_vm1, %v477_v9, %v681_v17 }
 0x3bb   : > { %v693_v21 = vsel %vm692_vm3, %v691_v19, %v685_v18 }
 0x3bc   : > { %v695_v22 = vsel %vm694_vm4, %v693_v21, %v689_v20 }
 0x3bd   : > { %883 = vmatmul.msk.f32.vlgmr.msra.gmra.mxu2 %vm340_vm0, %v695_v22 }
 0x440   : > { %v724_v24 = vpop.f32.mrf.mxu2 }
 0x441   : > { %v725_v25 = vadd.f32 %v983_v23, %v724_v24 }
 0x443   : > { %727 = vst.msk [vmem:[%s334_s30] sm:$0xff] %vm340_vm0, %v725_v25 }
 0x444   : > { %1177 = shalt.err (!%p1174_p9)
}
 0x445   : > { %906 = dma.vmem_to_hbm [thread:$0]  (%p1360_p4), %s742_s1, 128, %s744_s29, %s729_s28  }
 0x446 PF: > { %s755_s15 = sand.u32 1, %s1212_s21   ;;  %p1502_p10 = scmp.ge.s32.totalorder %s1224_s24, 2 }
 0x447   : > { %s756_s18 = scalar_lea.sflag [#allocation4], %s755_s15 }
 0x448   : > { %p926_p13 = pnand %p1502_p10, %p1364_p6 }
 0x44a   : > { %p927_p11 = pneg %p926_p13 }
 0x44c   : > { %1207 = dma.done.wait (%p927_p11), %s756_s18, 128  }
 0x44d   : > { %1209 = vsyncadd (%p927_p11), %s756_s18, 4294967168  ;;  %p21_p0 = scmp.ge.s32.totalorder %s1334_s9, 4   ;;  %s1503_s21 = smov %s1216_s22 }
 0x44e   : > { %s1504_s22 = smov %s1220_s23  ;;  %s1505_s23 = smov %s1345_s13 }
 0x44f   : > { %s1506_s24 = smov %s1334_s9  ;;  %23 = sbr.rel (!%p21_p0) target bundleno = 9 (0x9), region = 105 }
 0x454   :  { %762 = vsyncpa [#allocation3], 1 }
 0x455   :  { %764 = vsyncpa [#allocation3 + $0x1], 1 }
 0x456   :  { %765 = vsyncpa [#allocation6], 1 }
 0x457   :  { %766 = vsyncpa [#allocation9], 1 }
 0x458   :  { %767 = vsyncpa [#allocation4], 1 }
 0x459   :  { %769 = vsyncpa [#allocation4 + $0x1], 1 }

</bundles_post_ra>
